<compile_context>
chip_gen: v6e
topology: v6e:2x2x1
jax: 0.10.0
libtpu: 0.0.40
codegen_flags: <defaults>
</compile_context>

<pallas_src>
import functools

import jax
import jax.numpy as jnp
from jax.experimental import pallas as pl
from jax.experimental.pallas import tpu as pltpu


_DEFAULT_TILE_ROWS = 4096  # folded rows per grid step (see sizing note above)


def _make_kernel(n_feature: int, fold: int):
    F = n_feature

    def kernel(x_ref, w_ref, b_ref, o_ref):
        # x_ref: (TILE_R, fold*F)   w_ref: (1, fold*F)   b_ref: (1,) in SMEM
        # o_ref: (TILE_R, fold)
        x = x_ref[...].astype(jnp.float32)       # in-kernel upcast (bf16 ok)
        w = w_ref[...].astype(jnp.float32)       # broadcast over rows (VPU)
        prod = x * w
        b = b_ref[0]                             # SMEM scalar

        cols = []
        for j in range(fold):                    # static, unrolled
            seg = prod[:, j * F:(j + 1) * F]     # (TILE_R, F) lane slice
            logit = jnp.sum(seg, axis=-1, keepdims=True) + b  # (TILE_R, 1)
            cols.append(jax.nn.sigmoid(logit))
        o_ref[...] = jnp.concatenate(cols, axis=-1).astype(o_ref.dtype)

    return kernel


def grapes_detector(x, weight, bias, n_feature, *, tile_rows=_DEFAULT_TILE_ROWS):
    """Forward pass of GrapesDetector.

    x:      any shape whose total size is divisible by n_feature
    weight: (1, n_feature)  -- PyTorch nn.Linear layout
    bias:   (1,)
    returns (N, 1) float32 with N = x.size // n_feature
    """
    F = int(n_feature)
    x2d = x.reshape(-1, F)                       # the .view(-1, F); free
    n = x2d.shape[0]

    # Fold FOLD consecutive rows into one 128-lane-wide row when possible.
    fold = 128 // F if (F <= 128 and 128 % F == 0) else 1

    pad = (-n) % fold
    if pad:                                      # rare; only pads when needed
        x2d = jnp.pad(x2d, ((0, pad), (0, 0)))
    r = (n + pad) // fold
    xf = x2d.reshape(r, fold * F)                # free row-major reshape

    wf = jnp.tile(weight.reshape(1, F).astype(jnp.float32), (1, fold))
    b = bias.reshape(1).astype(jnp.float32)      # scalar -> SMEM

    tile_r = min(int(tile_rows), r)
    if tile_r < r:
        tile_r = max(8, (tile_r // 8) * 8)       # keep the (8, 128) rule
    grid = (pl.cdiv(r, tile_r),)                 # ragged tail handled by Pallas

    out = pl.pallas_call(
        _make_kernel(F, fold),
        out_shape=jax.ShapeDtypeStruct((r, fold), jnp.float32),
        grid_spec=pltpu.PrefetchScalarGridSpec(
            num_scalar_prefetch=0,
            grid=grid,
            in_specs=[
                # streamed x tiles (double-buffered by Pallas)
                pl.BlockSpec((tile_r, fold * F), lambda i: (i, 0)),
                # weight row: constant index_map -> stays resident in VMEM
                pl.BlockSpec((1, fold * F), lambda i: (0, 0)),
                # bias scalar lives in SMEM
                pl.BlockSpec(memory_space=pltpu.MemorySpace.SMEM),
            ],
            out_specs=pl.BlockSpec((tile_r, fold), lambda i: (i, 0)),
        ),
        compiler_params=pltpu.CompilerParams(
            dimension_semantics=("parallel",),   # no cross-step state; 2 TCs on v7x
        ),
    )(xf, wf, b)

    # Row-major flatten of (r, fold) restores the original row order.
    return out.reshape(-1, 1)[:n]


if __name__ == "__main__":
    key = jax.random.PRNGKey(0)
    n_feature = 32

    kx, kw, kb = jax.random.split(key, 3)
    # input: (2, 4, 32) -> view(-1, 32) = (8, 32)
    x = jax.random.normal(kx, (2, 4, n_feature), dtype=jnp.float32)
    bound = 1.0 / (n_feature ** 0.5)
    weight = jax.random.uniform(
        kw, (1, n_feature), minval=-bound, maxval=bound, dtype=jnp.float32
    )
    bias = jax.random.uniform(
        kb, (1,), minval=-bound, maxval=bound, dtype=jnp.float32
    )

    fwd = jax.jit(functools.partial(grapes_detector, n_feature=n_feature))
    y = fwd(x, weight, bias)
    jax.block_until_ready(y)

    x2d = x.reshape(-1, n_feature)
    y_ref = jax.nn.sigmoid(x2d @ weight.T + bias)
    assert y.shape == (x2d.shape[0], 1)
    assert jnp.allclose(y, y_ref, atol=1e-5, rtol=1e-5)

    # Second check: exercises the multi-tile grid with a partial last block
    # and the N % fold padding path (N = 40 rows, tile_rows = 8 folded rows).
    x_b = jax.random.normal(jax.random.PRNGKey(1), (5, 8, n_feature), jnp.float32)
    y_b = jax.jit(
        functools.partial(grapes_detector, n_feature=n_feature, tile_rows=8)
    )(x_b, weight, bias)
    jax.block_until_ready(y_b)
    y_b_ref = jax.nn.sigmoid(x_b.reshape(-1, n_feature) @ weight.T + bias)
    assert y_b.shape == (40, 1)
    assert jnp.allclose(y_b, y_b_ref, atol=1e-5, rtol=1e-5)

    print("KERNEL_OK")
</pallas_src>

<mosaic_0001>
module attributes {stable_mosaic.version = 11 : i64} {
  func.func @kernel(%arg0: i32, %arg1: memref<2x128xf32, #tpu.memory_space<vmem>>, %arg2: memref<1x128xf32, #tpu.memory_space<vmem>>, %arg3: memref<1xf32, #tpu.memory_space<smem>>, %arg4: memref<2x4xf32, #tpu.memory_space<vmem>>) attributes {dimension_semantics = [#tpu.dimension_semantics<parallel>], iteration_bounds = array<i64: 1>, scalar_prefetch = 0 : i64, scratch_operands = 0 : i64, tpu.core_type = #tpu.core_type<tc>, window_params = [{transform_indices = @transform_0, window_bounds = array<i64: 2, 128>}, {pipeline_mode = #tpu.pipeline_mode<synchronous>, transform_indices = @transform_1, window_bounds = array<i64: 1, 128>}, {transform_indices = @transform_2, window_bounds = array<i64: 1>}, {transform_indices = @transform_3, window_bounds = array<i64: 2, 4>}]} {
    %c0 = arith.constant 0 : index
    %c0_0 = arith.constant 0 : index
    %0 = vector.load %arg1[%c0, %c0_0] : memref<2x128xf32, #tpu.memory_space<vmem>>, vector<2x128xf32>
    %c0_1 = arith.constant 0 : index
    %c0_2 = arith.constant 0 : index
    %1 = vector.load %arg2[%c0_1, %c0_2] : memref<1x128xf32, #tpu.memory_space<vmem>>, vector<1x128xf32>
    %2 = vector.broadcast %1 : vector<1x128xf32> to vector<2x128xf32>
    %3 = arith.mulf %0, %2 : vector<2x128xf32>
    %c0_3 = arith.constant 0 : index
    %4 = memref.load %arg3[%c0_3] : memref<1xf32, #tpu.memory_space<smem>>
    %5 = vector.extract_strided_slice %3 {offsets = [0, 0], sizes = [2, 32], strides = [1, 1]} : vector<2x128xf32> to vector<2x32xf32>
    %cst = arith.constant dense<0.000000e+00> : vector<2xf32>
    %6 = vector.multi_reduction <add>, %5, %cst [1] : vector<2x32xf32> to vector<2xf32>
    %7 = vector.shape_cast %6 : vector<2xf32> to vector<2x1xf32>
    %8 = vector.broadcast %4 : f32 to vector<2x1xf32>
    %9 = arith.addf %7, %8 : vector<2x1xf32>
    %10 = arith.negf %9 : vector<2x1xf32>
    %11 = math.exp %10 : vector<2x1xf32>
    %cst_4 = arith.constant 1.000000e+00 : f32
    %12 = vector.broadcast %cst_4 : f32 to vector<2x1xf32>
    %13 = arith.addf %12, %11 : vector<2x1xf32>
    %14 = arith.divf %12, %13 : vector<2x1xf32>
    %15 = vector.extract_strided_slice %3 {offsets = [0, 32], sizes = [2, 32], strides = [1, 1]} : vector<2x128xf32> to vector<2x32xf32>
    %cst_5 = arith.constant dense<0.000000e+00> : vector<2xf32>
    %16 = vector.multi_reduction <add>, %15, %cst_5 [1] : vector<2x32xf32> to vector<2xf32>
    %17 = vector.shape_cast %16 : vector<2xf32> to vector<2x1xf32>
    %18 = vector.broadcast %4 : f32 to vector<2x1xf32>
    %19 = arith.addf %17, %18 : vector<2x1xf32>
    %20 = arith.negf %19 : vector<2x1xf32>
    %21 = math.exp %20 : vector<2x1xf32>
    %cst_6 = arith.constant 1.000000e+00 : f32
    %22 = vector.broadcast %cst_6 : f32 to vector<2x1xf32>
    %23 = arith.addf %22, %21 : vector<2x1xf32>
    %24 = arith.divf %22, %23 : vector<2x1xf32>
    %25 = vector.extract_strided_slice %3 {offsets = [0, 64], sizes = [2, 32], strides = [1, 1]} : vector<2x128xf32> to vector<2x32xf32>
    %cst_7 = arith.constant dense<0.000000e+00> : vector<2xf32>
    %26 = vector.multi_reduction <add>, %25, %cst_7 [1] : vector<2x32xf32> to vector<2xf32>
    %27 = vector.shape_cast %26 : vector<2xf32> to vector<2x1xf32>
    %28 = vector.broadcast %4 : f32 to vector<2x1xf32>
    %29 = arith.addf %27, %28 : vector<2x1xf32>
    %30 = arith.negf %29 : vector<2x1xf32>
    %31 = math.exp %30 : vector<2x1xf32>
    %cst_8 = arith.constant 1.000000e+00 : f32
    %32 = vector.broadcast %cst_8 : f32 to vector<2x1xf32>
    %33 = arith.addf %32, %31 : vector<2x1xf32>
    %34 = arith.divf %32, %33 : vector<2x1xf32>
    %35 = vector.extract_strided_slice %3 {offsets = [0, 96], sizes = [2, 32], strides = [1, 1]} : vector<2x128xf32> to vector<2x32xf32>
    %cst_9 = arith.constant dense<0.000000e+00> : vector<2xf32>
    %36 = vector.multi_reduction <add>, %35, %cst_9 [1] : vector<2x32xf32> to vector<2xf32>
    %37 = vector.shape_cast %36 : vector<2xf32> to vector<2x1xf32>
    %38 = vector.broadcast %4 : f32 to vector<2x1xf32>
    %39 = arith.addf %37, %38 : vector<2x1xf32>
    %40 = arith.negf %39 : vector<2x1xf32>
    %41 = math.exp %40 : vector<2x1xf32>
    %cst_10 = arith.constant 1.000000e+00 : f32
    %42 = vector.broadcast %cst_10 : f32 to vector<2x1xf32>
    %43 = arith.addf %42, %41 : vector<2x1xf32>
    %44 = arith.divf %42, %43 : vector<2x1xf32>
    %45 = tpu.concatenate %14, %24, %34, %44 in 1 : vector<2x1xf32>, vector<2x1xf32>, vector<2x1xf32>, vector<2x1xf32> -> vector<2x4xf32>
    %c0_11 = arith.constant 0 : index
    %c0_12 = arith.constant 0 : index
    %46 = vector.load %arg4[%c0_11, %c0_12] : memref<2x4xf32, #tpu.memory_space<vmem>>, vector<2x4xf32>
    tpu.vector_store %arg4[%c0_11, %c0_12], %45 {strides = array<i32>} : memref<2x4xf32, #tpu.memory_space<vmem>>, vector<2x4xf32>,
    return
  }
  func.func @transform_0(%arg0: i32) -> (i32, i32) {
    %c0_i32 = arith.constant 0 : i32
    %c0_i32_0 = arith.constant 0 : i32
    return %arg0, %c0_i32 : i32, i32
  }
  func.func @transform_1(%arg0: i32) -> (i32, i32) {
    %c0_i32 = arith.constant 0 : i32
    %c0_i32_0 = arith.constant 0 : i32
    %c0_i32_1 = arith.constant 0 : i32
    return %c0_i32, %c0_i32_0 : i32, i32
  }
  func.func @transform_2(%arg0: i32) -> i32 {
    %c0_i32 = arith.constant 0 : i32
    %c0_i32_0 = arith.constant 0 : i32
    return %c0_i32 : i32
  }
  func.func @transform_3(%arg0: i32) -> (i32, i32) {
    %c0_i32 = arith.constant 0 : i32
    %c0_i32_0 = arith.constant 0 : i32
    return %arg0, %c0_i32 : i32, i32
  }
}

</mosaic_0001>

<bundles_post_ra>
// kernel: grapes_detector.1
= control target key start
LH: loop header
LB: loop body
LE: loop exit
PB: predicated region body
PF: predicated region fallthrough
CT: control target
= control target key end

     0   :  { %s113_s16 = smov 96   ;;  %s114_s17 = smov 32   ;;  %vm25_vm0 = vcmask 254976   ;;  %vm77_vm1 = vcmask 7168   ;;  %vm79_vm2 = vcmask 15360   ;;  %vm81_vm3 = vcmask 23552   ;;  %s148_s0 = inlined_call_operand.vmem [shape: f32[2,128], index: 0, kind: input, shape index: {}]   ;;  %s149_s1 = inlined_call_operand.vmem [shape: f32[1,128], index: 1, kind: input, shape index: {}]   ;;  %s150_s2 = inlined_call_operand.<no memory space> [shape: f32[1], index: 2, kind: input, shape index: {}]   ;;  %s151_s3 = inlined_call_operand.vmem [shape: f32[2,4], index: 3, kind: output, shape index: {}]  }
   0x1   :  { %v15_v0 = vld [vmem:[%s148_s0] sm:$0x3]  ;;  %s115_s18 = smov 64   ;;  %v29_v10 = vstv %s150_s2  ;;  %vm83_vm4 = vcmask 25600  }
   0x2   :  { %v89_v1 = vld [vmem:[%s149_s1] ss:$0 sm:$0xff] }
   0x3   :  { %v23_v2 = vmul.f32 %v89_v1, %v15_v0 }
   0x5   :  { %38 = vrot.lane.b32.xlu0 %v23_v2, %s113_s16  ;;  %64 = vrot.lane.b32.xlu1 %v23_v2, %s114_s17  ;;  %v26_v3 = vsel %vm25_vm0, %v23_v2, 0.0 }
   0x9   :  { %51 = vrot.lane.b32.xlu0 %v23_v2, %s115_s18 }
  0x29   :  { %27 = vadd.xlane.f32.xlu1 %v26_v3 }
  0x77   :  { %v39_v4 = vpop.permute.xlu0 %38  ;;  %v65_v5 = vpop.permute.xlu1 %64 }
  0x78   :  { %v41_v6 = vsel %vm25_vm0, %v39_v4, 0.0  ;;  %v67_v7 = vsel %vm25_vm0, %v65_v5, 0.0 }
  0x79   :  { %42 = vadd.xlane.f32.xlu0 %v41_v6  ;;  %68 = vadd.xlane.f32.xlu1 %v67_v7 }
  0x7b   :  { %v52_v8 = vpop.permute.xlu0 %51 }
  0x7c   :  { %v54_v9 = vsel %vm25_vm0, %v52_v8, 0.0 }
  0x7d   :  { %55 = vadd.xlane.f32.xlu0 %v54_v9 }
  0xb2   :  { %v28_v11 = vpop.xlane.xlu1 %27 }
  0xb3   :  { %v30_v12 = vadd.f32 %v29_v10, %v28_v11 }
  0xb5   :  { %v90_v13 = vmul.f32 -1.442695, %v30_v12 }
  0xb7   :  { %97 = vpow2.f32 %v90_v13 }
  0xc4   :  { %v98_v23 = vpop.eup %97 }
  0xc5   :  { %v34_v24 = vadd.f32 1.0, %v98_v23 }
 0x102   :  { %v43_v14 = vpop.xlane.xlu0 %42  ;;  %v69_v15 = vpop.xlane.xlu1 %68 }
 0x103   :  { %v44_v16 = vadd.f32 %v43_v14, %v29_v10  ;;  %v70_v17 = vadd.f32 %v69_v15, %v29_v10 }
 0x105   :  { %v91_v18 = vmul.f32 -1.442695, %v44_v16  ;;  %v93_v19 = vmul.f32 -1.442695, %v70_v17 }
 0x106   :  { %v56_v20 = vpop.xlane.xlu0 %55 }
 0x107   :  { %99 = vpow2.f32 %v91_v18  ;;  %v57_v21 = vadd.f32 %v56_v20, %v29_v10 }
 0x108   :  { %101 = vpow2.f32 %v93_v19 }
 0x109   :  { %v92_v22 = vmul.f32 -1.442695, %v57_v21 }
 0x10b   :  { %103 = vpow2.f32 %v92_v22 }
 0x10c   :  { %105 = vrcp.f32 %v34_v24 }
 0x114   :  { %v100_v25 = vpop.eup %99 }
 0x115   :  { %v102_v26 = vpop.eup %101  ;;  %v48_v27 = vadd.f32 1.0, %v100_v25 }
 0x116   :  { %v74_v28 = vadd.f32 1.0, %v102_v26 }
 0x117   :  { %107 = vrcp.f32 %v48_v27 }
 0x118   :  { %v104_v29 = vpop.eup %103  ;;  %109 = vrcp.f32 %v74_v28 }
 0x119   :  { %v61_v30 = vadd.f32 1.0, %v104_v29  ;;  %v106_v31 = vpop.eup %105 }
 0x11b   :  { %111 = vrcp.f32 %v61_v30 }
 0x124   :  { %v108_v32 = vpop.eup %107 }
 0x125   :  { %v110_v33 = vpop.eup %109  ;;  %v78_v35 = vsel %vm77_vm1, %v106_v31, %v108_v32 }
 0x128   :  { %v112_v34 = vpop.eup %111 }
 0x129   :  { %v80_v36 = vsel %vm79_vm2, %v78_v35, %v112_v34 }
 0x12a   :  { %v82_v37 = vsel %vm81_vm3, %v80_v36, %v110_v33 }
 0x12b   :  { %84 = vst.msk [vmem:[%s151_s3] sm:$0x3] %vm83_vm4, %v82_v37 }

</bundles_post_ra>
